<compile_context>
chip_gen: v7x
topology: tpu7x:2x2x1
jax: 0.10.0
libtpu: 0.0.40
codegen_flags: <defaults>
</compile_context>

<pallas_src>
import numpy as np
import jax
import jax.numpy as jnp
from jax import lax
from jax.experimental import pallas as pl
from jax.experimental.pallas import tpu as pltpu

LANE = 128
MAX_TILE_L = 1024   # lane-tile cap; well under VMEM limits on v5e/v6e/v7x


# ----------------------------------------------------------------------------
# Pallas kernel: the ELBO hot path (one lane-tile of observations per step)
# ----------------------------------------------------------------------------
def _make_kernel(M, inv_noise):
    """Build the ELBO kernel body (closes over static M and 1/noise)."""

    def kernel(vu_ref, pk_ref, out_ref):
        # vu_ref: (M-1, M, L)  strictly-upper columns of V_sub; column i lives
        #                      at plane i-1 (the all-zero column-0 plane is
        #                      dropped on the host).
        # pk_ref: (3M+3, L) packed per-observation rows:
        #         [0:M)    V_sub diagonal
        #         [M:2M)   U_sub column
        #         [2M:3M)  mean - mean_post over the ancestor set
        #         [3M]     valid mask (1 real obs / 0 padding)
        #         [3M+1]   y - mu_post at j            (0 on padding)
        #         [3M+2]   log U_jj - log |V_jj|       (0 on padding)
        Vt = vu_ref[...]                                  # (M-1, M, L)
        P = pk_ref[...]                                   # (3M+3, L)

        vdiag = P[0:M, :]
        U = P[M:2 * M, :]
        MD = P[2 * M:3 * M, :]
        valid = P[3 * M:3 * M + 1, :]
        diff = P[3 * M + 1:3 * M + 2, :]
        logdet_p = P[3 * M + 2:3 * M + 3, :]

        inv_d = 1.0 / vdiag                               # hoisted exact reciprocals

        # Two RHS fused on a leading axis of size 2:
        #   slot 0: valid * e_{M-1}  -> marginalVarPost
        #   slot 1: U_sub            -> innerCov
        row2 = lax.broadcasted_iota(jnp.int32, (M, 1), 0)
        x0 = jnp.where(row2 == M - 1, valid, 0.0)         # (M, L)
        X = jnp.stack([x0, U], axis=0)                    # (2, M, L)

        row3 = lax.broadcasted_iota(jnp.int32, (1, M, 1), 1)
        # Batched upper-triangular back-substitution, fully unrolled (M is
        # small & static).  All ops are lane-parallel VPU work; no MXU needed.
        for i in range(M - 1, 0, -1):
            xi = X[:, i:i + 1, :] * inv_d[i:i + 1, :]     # (2, 1, L) solved entry i
            vcol = Vt[i - 1][None, :, :]                  # (1, M, L): rows >= i are 0
            X = jnp.where(row3 == i, xi, X - vcol * xi)   # rows > i untouched
        # i == 0: nothing above the diagonal -> just the divide.
        x0f = X[:, 0:1, :] * inv_d[0:1, :]
        X = jnp.where(row3 == 0, x0f, X)

        marg = jnp.sum(X[0] * X[0], axis=0, keepdims=True)    # (1, L)
        cov = jnp.sum(X[1] * X[1], axis=0, keepdims=True)     # (1, L)
        um = jnp.sum(U * MD, axis=0, keepdims=True)           # (1, L)

        # Per-lane ELBO contribution with all coefficients folded in-kernel.
        # Padding lanes contribute exactly 0 (U = MD = diff = logdet = 0,
        # valid = 0 -> marg = 0).
        elbo = (logdet_p
                - 0.5 * um * um
                - 0.5 * cov
                - (0.5 * inv_noise) * (marg + diff * diff))    # (1, L)
        out_ref[...] = elbo[None, :, :]                        # (1, 1, L)

    return kernel


def _pick_tile(bpad):
    """Largest lane tile <= MAX_TILE_L that divides bpad while keeping >= 2
    grid blocks (so the 'parallel' axis can shard across v7x's 2 TCs)."""
    tile = LANE
    while (tile < MAX_TILE_L
           and bpad % (tile * 2) == 0
           and bpad // (tile * 2) >= 2):
        tile *= 2
    return tile


def viva_elbo(VuTr, PK, noise, batch_size):
    Mm1, M, Bpad = VuTr.shape
    assert Mm1 == M - 1 and M >= 2
    n_rows = PK.shape[0]
    assert n_rows == 3 * M + 3
    assert Bpad % LANE == 0

    tile_l = _pick_tile(Bpad)
    num_chunks = Bpad // tile_l

    kernel = _make_kernel(M, float(1.0 / noise))

    partials = pl.pallas_call(
        kernel,
        out_shape=jax.ShapeDtypeStruct((num_chunks, 1, tile_l), jnp.float32),
        grid_spec=pltpu.PrefetchScalarGridSpec(
            num_scalar_prefetch=0,
            grid=(num_chunks,),
            in_specs=[
                pl.BlockSpec((M - 1, M, tile_l), lambda c: (0, 0, c)),
                pl.BlockSpec((n_rows, tile_l), lambda c: (0, c)),
            ],
            out_specs=pl.BlockSpec((1, 1, tile_l), lambda c: (c, 0, 0)),
        ),
        compiler_params=pltpu.CompilerParams(
            dimension_semantics=("parallel",)),
    )(VuTr, PK)

    # Tiny finalization: sum the per-lane ELBO contributions and add the
    # Gaussian expected-likelihood normalization constant.
    # TODO(synk): forward() passes noise=None and uses MC_likelihood (Monte
    # Carlo expectation, not provided); we use the exact Gaussian closed form
    # (the `noise is not None` branch of compute_ELBO) instead.
    noise_f = jnp.float32(noise)
    const = -jnp.float32(batch_size) * 0.5 * jnp.log(2.0 * jnp.pi * noise_f)
    return jnp.sum(partials) + const


# ----------------------------------------------------------------------------
# Host-side glue: deterministic synthetic sparse factors + ancestor gathering
# (mirrors the sub-matrix construction in compute_ELBO's sparse branch).
# ----------------------------------------------------------------------------
# TODO(synk): maxmin ordering (order_X_f_y), CSC sparsity construction
# (find_csc / find_inv_chol) and the Ancestor data structure are host-side
# preprocessing with no Pallas equivalent; they are synthesized here.
def build_problem(key, n=320, batch=200, max_anc=8):
    k1, k2, k3, k4, k5, k6, k7 = jax.random.split(key, 7)

    # ancestor sets: contiguous windows ending at j (ascending, last elem == j)
    ances = [np.arange(max(0, j - max_anc + 1), j + 1) for j in range(n)]

    rows = np.arange(n)[:, None]
    cols = np.arange(n)[None, :]
    sp_mask = (rows <= cols) & (rows > cols - max_anc)   # upper-tri band sparsity

    U_dense = np.where(sp_mask, 0.1 * np.asarray(jax.random.normal(k1, (n, n))), 0.0)
    np.fill_diagonal(U_dense, 0.8 + 0.2 * np.abs(np.asarray(jax.random.normal(k2, (n,)))))
    V_dense = np.where(sp_mask, 0.1 * np.asarray(jax.random.normal(k3, (n, n))), 0.0)
    np.fill_diagonal(V_dense, 0.9 + 0.2 * np.abs(np.asarray(jax.random.normal(k4, (n,)))))

    y = np.asarray(jax.random.normal(k5, (n,)))
    mu_post = 0.3 * np.asarray(jax.random.normal(k6, (n,)))
    mean = np.zeros(n)                                   # prior mean of f

    # mini-batch indices (sorted, unique)
    mini = np.sort(np.asarray(jax.random.permutation(k7, n))[:batch])
    B = len(mini)
    M = max(len(ances[int(j)]) for j in mini)

    Bpad = ((B + LANE - 1) // LANE) * LANE

    # Batch-last (lane-dense) layout.  Padding lanes are benign:
    # V = I (strict upper 0, diag 1), U = MD = 0, diff = logdet = 0, valid = 0.
    VuTr = np.zeros((M - 1, M, Bpad), np.float32)  # VuTr[i-1,k,b] = strict-upper V_sub[b][k,i]
    vdiag = np.ones((M, Bpad), np.float32)
    U_sub = np.zeros((M, Bpad), np.float32)
    MD_sub = np.zeros((M, Bpad), np.float32)
    u_diag = np.ones((1, Bpad), np.float32)
    v_diag = np.ones((1, Bpad), np.float32)
    y_b = np.zeros((1, Bpad), np.float32)
    mu_b = np.zeros((1, Bpad), np.float32)
    valid = np.zeros((1, Bpad), np.float32)

    for b, j in enumerate(mini):
        j = int(j)
        a = ances[j]
        L = len(a)
        off = M - L
        Vb = np.eye(M)
        Vb[off:, off:] = V_dense[np.ix_(a, a)]
        VuTr[:, :, b] = np.triu(Vb, k=1).T[1:, :]   # column-major strict-upper, plane 0 dropped
        vdiag[:, b] = np.diag(Vb)
        U_sub[off:, b] = U_dense[a, j]
        MD_sub[off:, b] = (mean - mu_post)[a]
        u_diag[0, b] = U_dense[j, j]
        v_diag[0, b] = V_dense[j, j]
        y_b[0, b] = y[j]
        mu_b[0, b] = mu_post[j]
        valid[0, b] = 1.0

    # Host precompute of the per-observation scalar rows that are independent
    # of the triangular solves (feedback: keep them off the kernel's EUP).
    diff = (y_b - mu_b) * valid
    logdet_p = (np.log(u_diag) - np.log(np.abs(v_diag))) * valid

    PK = np.concatenate([vdiag, U_sub, MD_sub, valid, diff, logdet_p],
                        axis=0).astype(np.float32)        # (3*M + 3, Bpad)

    noise = 0.1
    ref_inputs = (vdiag, U_sub, MD_sub, u_diag, v_diag, y_b, mu_b, valid)
    return VuTr, PK, ref_inputs, noise, B


def ref_elbo(VuTr, vdiag, U_sub, MD_sub, u_diag, v_diag, y_b, mu_b, valid,
             noise, batch_size):
    Mm1, M, Bpad = VuTr.shape
    marg_sum = cov = mean2 = logdet = diff2 = 0.0
    e = np.zeros(M, np.float64)
    e[-1] = 1.0
    for b in range(Bpad):
        if valid[0, b] < 0.5:
            continue
        Vb = np.diag(vdiag[:, b].astype(np.float64))
        for i in range(1, M):
            Vb[:i, i] = VuTr[i - 1, :i, b].astype(np.float64)
        x0 = np.linalg.solve(Vb, e)
        x1 = np.linalg.solve(Vb, U_sub[:, b].astype(np.float64))
        marg_sum += float(x0 @ x0)
        cov += float(x1 @ x1)
        um = float(U_sub[:, b].astype(np.float64) @ MD_sub[:, b].astype(np.float64))
        mean2 += um * um
        logdet += np.log(float(u_diag[0, b])) - np.log(abs(float(v_diag[0, b])))
        diff2 += (float(y_b[0, b]) - float(mu_b[0, b])) ** 2
    exp_lik = (-batch_size / 2.0 * np.log(2.0 * np.pi * noise)
               - (diff2 + marg_sum) / 2.0 / noise)
    return logdet - 0.5 * mean2 - 0.5 * cov + exp_lik


if __name__ == "__main__":
    key = jax.random.PRNGKey(0)
    VuTr, PK, ref_inputs, noise, B = build_problem(key, n=320, batch=200, max_anc=8)

    elbo = jax.block_until_ready(
        viva_elbo(jnp.asarray(VuTr), jnp.asarray(PK), noise, B))
    expected = ref_elbo(VuTr, *ref_inputs, noise, B)

    assert np.isfinite(float(elbo))
    rel = abs(float(elbo) - float(expected)) / (1.0 + abs(float(expected)))
    assert rel <= 1e-3, (float(elbo), float(expected), rel)
    print("KERNEL_OK")
</pallas_src>

<mosaic_0001>
module attributes {stable_mosaic.version = 11 : i64} {
  func.func @kernel(%arg0: i32, %arg1: memref<7x8x128xf32, #tpu.memory_space<vmem>>, %arg2: memref<27x128xf32, #tpu.memory_space<vmem>>, %arg3: memref<1x1x128xf32, #tpu.memory_space<vmem>>) attributes {dimension_semantics = [#tpu.dimension_semantics<parallel>], iteration_bounds = array<i64: 2>, scalar_prefetch = 0 : i64, scratch_operands = 0 : i64, tpu.core_type = #tpu.core_type<tc>, window_params = [{transform_indices = @transform_0, window_bounds = array<i64: 7, 8, 128>}, {transform_indices = @transform_1, window_bounds = array<i64: 27, 128>}, {transform_indices = @transform_2, window_bounds = array<i64: 1, 1, 128>}]} {
    %c0 = arith.constant 0 : index
    %c0_0 = arith.constant 0 : index
    %c0_1 = arith.constant 0 : index
    %0 = vector.load %arg1[%c0, %c0_0, %c0_1] : memref<7x8x128xf32, #tpu.memory_space<vmem>>, vector<7x8x128xf32>
    %c0_2 = arith.constant 0 : index
    %c0_3 = arith.constant 0 : index
    %1 = vector.load %arg2[%c0_2, %c0_3] : memref<27x128xf32, #tpu.memory_space<vmem>>, vector<27x128xf32>
    %2 = vector.extract_strided_slice %1 {offsets = [0, 0], sizes = [8, 128], strides = [1, 1]} : vector<27x128xf32> to vector<8x128xf32>
    %3 = vector.extract_strided_slice %1 {offsets = [8, 0], sizes = [8, 128], strides = [1, 1]} : vector<27x128xf32> to vector<8x128xf32>
    %4 = vector.extract_strided_slice %1 {offsets = [16, 0], sizes = [8, 128], strides = [1, 1]} : vector<27x128xf32> to vector<8x128xf32>
    %5 = vector.extract_strided_slice %1 {offsets = [24, 0], sizes = [1, 128], strides = [1, 1]} : vector<27x128xf32> to vector<1x128xf32>
    %6 = vector.extract_strided_slice %1 {offsets = [25, 0], sizes = [1, 128], strides = [1, 1]} : vector<27x128xf32> to vector<1x128xf32>
    %7 = vector.extract_strided_slice %1 {offsets = [26, 0], sizes = [1, 128], strides = [1, 1]} : vector<27x128xf32> to vector<1x128xf32>
    %cst = arith.constant 1.000000e+00 : f32
    %8 = vector.broadcast %cst : f32 to vector<8x128xf32>
    %9 = arith.divf %8, %2 : vector<8x128xf32>
    %10 = tpu.iota {dimensions = array<i32: 0>} : vector<8x1xi32>
    %c7_i32 = arith.constant 7 : i32
    %11 = vector.broadcast %c7_i32 : i32 to vector<8x1xi32>
    %12 = arith.cmpi eq, %10, %11 : vector<8x1xi32>
    %cst_4 = arith.constant 0.000000e+00 : f32
    %13 = vector.shape_cast %12 : vector<8x1xi1> to vector<8x1xi1>
    %14 = vector.broadcast %13 : vector<8x1xi1> to vector<8x128xi1>
    %15 = vector.shape_cast %5 : vector<1x128xf32> to vector<1x128xf32>
    %16 = vector.broadcast %15 : vector<1x128xf32> to vector<8x128xf32>
    %17 = vector.broadcast %cst_4 : f32 to vector<8x128xf32>
    %18 = arith.select %14, %16, %17 : vector<8x128xi1>, vector<8x128xf32>
    %19 = vector.shape_cast %18 : vector<8x128xf32> to vector<1x8x128xf32>
    %20 = vector.shape_cast %3 : vector<8x128xf32> to vector<1x8x128xf32>
    %21 = tpu.concatenate %19, %20 in 0 : vector<1x8x128xf32>, vector<1x8x128xf32> -> vector<2x8x128xf32>
    %22 = tpu.iota {dimensions = array<i32: 1>} : vector<1x8x1xi32>
    %23 = vector.extract_strided_slice %21 {offsets = [0, 7, 0], sizes = [2, 1, 128], strides = [1, 1, 1]} : vector<2x8x128xf32> to vector<2x1x128xf32>
    %24 = vector.extract_strided_slice %9 {offsets = [7, 0], sizes = [1, 128], strides = [1, 1]} : vector<8x128xf32> to vector<1x128xf32>
    %25 = vector.shape_cast %24 : vector<1x128xf32> to vector<1x1x128xf32>
    %26 = vector.broadcast %25 : vector<1x1x128xf32> to vector<2x1x128xf32>
    %27 = arith.mulf %23, %26 : vector<2x1x128xf32>
    %28 = vector.extract_strided_slice %0 {offsets = [6, 0, 0], sizes = [1, 8, 128], strides = [1, 1, 1]} : vector<7x8x128xf32> to vector<1x8x128xf32>
    %29 = vector.shape_cast %28 : vector<1x8x128xf32> to vector<8x128xf32>
    %30 = vector.shape_cast %29 : vector<8x128xf32> to vector<1x8x128xf32>
    %c7_i32_5 = arith.constant 7 : i32
    %31 = vector.broadcast %c7_i32_5 : i32 to vector<1x8x1xi32>
    %32 = arith.cmpi eq, %22, %31 : vector<1x8x1xi32>
    %33 = vector.broadcast %30 : vector<1x8x128xf32> to vector<2x8x128xf32>
    %34 = vector.broadcast %27 : vector<2x1x128xf32> to vector<2x8x128xf32>
    %35 = arith.mulf %33, %34 : vector<2x8x128xf32>
    %36 = arith.subf %21, %35 : vector<2x8x128xf32>
    %37 = vector.shape_cast %32 : vector<1x8x1xi1> to vector<1x8x1xi1>
    %38 = vector.broadcast %37 : vector<1x8x1xi1> to vector<2x8x128xi1>
    %39 = vector.shape_cast %27 : vector<2x1x128xf32> to vector<2x1x128xf32>
    %40 = vector.broadcast %39 : vector<2x1x128xf32> to vector<2x8x128xf32>
    %41 = arith.select %38, %40, %36 : vector<2x8x128xi1>, vector<2x8x128xf32>
    %42 = vector.extract_strided_slice %41 {offsets = [0, 6, 0], sizes = [2, 1, 128], strides = [1, 1, 1]} : vector<2x8x128xf32> to vector<2x1x128xf32>
    %43 = vector.extract_strided_slice %9 {offsets = [6, 0], sizes = [1, 128], strides = [1, 1]} : vector<8x128xf32> to vector<1x128xf32>
    %44 = vector.shape_cast %43 : vector<1x128xf32> to vector<1x1x128xf32>
    %45 = vector.broadcast %44 : vector<1x1x128xf32> to vector<2x1x128xf32>
    %46 = arith.mulf %42, %45 : vector<2x1x128xf32>
    %47 = vector.extract_strided_slice %0 {offsets = [5, 0, 0], sizes = [1, 8, 128], strides = [1, 1, 1]} : vector<7x8x128xf32> to vector<1x8x128xf32>
    %48 = vector.shape_cast %47 : vector<1x8x128xf32> to vector<8x128xf32>
    %49 = vector.shape_cast %48 : vector<8x128xf32> to vector<1x8x128xf32>
    %c6_i32 = arith.constant 6 : i32
    %50 = vector.broadcast %c6_i32 : i32 to vector<1x8x1xi32>
    %51 = arith.cmpi eq, %22, %50 : vector<1x8x1xi32>
    %52 = vector.broadcast %49 : vector<1x8x128xf32> to vector<2x8x128xf32>
    %53 = vector.broadcast %46 : vector<2x1x128xf32> to vector<2x8x128xf32>
    %54 = arith.mulf %52, %53 : vector<2x8x128xf32>
    %55 = arith.subf %41, %54 : vector<2x8x128xf32>
    %56 = vector.shape_cast %51 : vector<1x8x1xi1> to vector<1x8x1xi1>
    %57 = vector.broadcast %56 : vector<1x8x1xi1> to vector<2x8x128xi1>
    %58 = vector.shape_cast %46 : vector<2x1x128xf32> to vector<2x1x128xf32>
    %59 = vector.broadcast %58 : vector<2x1x128xf32> to vector<2x8x128xf32>
    %60 = arith.select %57, %59, %55 : vector<2x8x128xi1>, vector<2x8x128xf32>
    %61 = vector.extract_strided_slice %60 {offsets = [0, 5, 0], sizes = [2, 1, 128], strides = [1, 1, 1]} : vector<2x8x128xf32> to vector<2x1x128xf32>
    %62 = vector.extract_strided_slice %9 {offsets = [5, 0], sizes = [1, 128], strides = [1, 1]} : vector<8x128xf32> to vector<1x128xf32>
    %63 = vector.shape_cast %62 : vector<1x128xf32> to vector<1x1x128xf32>
    %64 = vector.broadcast %63 : vector<1x1x128xf32> to vector<2x1x128xf32>
    %65 = arith.mulf %61, %64 : vector<2x1x128xf32>
    %66 = vector.extract_strided_slice %0 {offsets = [4, 0, 0], sizes = [1, 8, 128], strides = [1, 1, 1]} : vector<7x8x128xf32> to vector<1x8x128xf32>
    %67 = vector.shape_cast %66 : vector<1x8x128xf32> to vector<8x128xf32>
    %68 = vector.shape_cast %67 : vector<8x128xf32> to vector<1x8x128xf32>
    %c5_i32 = arith.constant 5 : i32
    %69 = vector.broadcast %c5_i32 : i32 to vector<1x8x1xi32>
    %70 = arith.cmpi eq, %22, %69 : vector<1x8x1xi32>
    %71 = vector.broadcast %68 : vector<1x8x128xf32> to vector<2x8x128xf32>
    %72 = vector.broadcast %65 : vector<2x1x128xf32> to vector<2x8x128xf32>
    %73 = arith.mulf %71, %72 : vector<2x8x128xf32>
    %74 = arith.subf %60, %73 : vector<2x8x128xf32>
    %75 = vector.shape_cast %70 : vector<1x8x1xi1> to vector<1x8x1xi1>
    %76 = vector.broadcast %75 : vector<1x8x1xi1> to vector<2x8x128xi1>
    %77 = vector.shape_cast %65 : vector<2x1x128xf32> to vector<2x1x128xf32>
    %78 = vector.broadcast %77 : vector<2x1x128xf32> to vector<2x8x128xf32>
    %79 = arith.select %76, %78, %74 : vector<2x8x128xi1>, vector<2x8x128xf32>
    %80 = vector.extract_strided_slice %79 {offsets = [0, 4, 0], sizes = [2, 1, 128], strides = [1, 1, 1]} : vector<2x8x128xf32> to vector<2x1x128xf32>
    %81 = vector.extract_strided_slice %9 {offsets = [4, 0], sizes = [1, 128], strides = [1, 1]} : vector<8x128xf32> to vector<1x128xf32>
    %82 = vector.shape_cast %81 : vector<1x128xf32> to vector<1x1x128xf32>
    %83 = vector.broadcast %82 : vector<1x1x128xf32> to vector<2x1x128xf32>
    %84 = arith.mulf %80, %83 : vector<2x1x128xf32>
    %85 = vector.extract_strided_slice %0 {offsets = [3, 0, 0], sizes = [1, 8, 128], strides = [1, 1, 1]} : vector<7x8x128xf32> to vector<1x8x128xf32>
    %86 = vector.shape_cast %85 : vector<1x8x128xf32> to vector<8x128xf32>
    %87 = vector.shape_cast %86 : vector<8x128xf32> to vector<1x8x128xf32>
    %c4_i32 = arith.constant 4 : i32
    %88 = vector.broadcast %c4_i32 : i32 to vector<1x8x1xi32>
    %89 = arith.cmpi eq, %22, %88 : vector<1x8x1xi32>
    %90 = vector.broadcast %87 : vector<1x8x128xf32> to vector<2x8x128xf32>
    %91 = vector.broadcast %84 : vector<2x1x128xf32> to vector<2x8x128xf32>
    %92 = arith.mulf %90, %91 : vector<2x8x128xf32>
    %93 = arith.subf %79, %92 : vector<2x8x128xf32>
    %94 = vector.shape_cast %89 : vector<1x8x1xi1> to vector<1x8x1xi1>
    %95 = vector.broadcast %94 : vector<1x8x1xi1> to vector<2x8x128xi1>
    %96 = vector.shape_cast %84 : vector<2x1x128xf32> to vector<2x1x128xf32>
    %97 = vector.broadcast %96 : vector<2x1x128xf32> to vector<2x8x128xf32>
    %98 = arith.select %95, %97, %93 : vector<2x8x128xi1>, vector<2x8x128xf32>
    %99 = vector.extract_strided_slice %98 {offsets = [0, 3, 0], sizes = [2, 1, 128], strides = [1, 1, 1]} : vector<2x8x128xf32> to vector<2x1x128xf32>
    %100 = vector.extract_strided_slice %9 {offsets = [3, 0], sizes = [1, 128], strides = [1, 1]} : vector<8x128xf32> to vector<1x128xf32>
    %101 = vector.shape_cast %100 : vector<1x128xf32> to vector<1x1x128xf32>
    %102 = vector.broadcast %101 : vector<1x1x128xf32> to vector<2x1x128xf32>
    %103 = arith.mulf %99, %102 : vector<2x1x128xf32>
    %104 = vector.extract_strided_slice %0 {offsets = [2, 0, 0], sizes = [1, 8, 128], strides = [1, 1, 1]} : vector<7x8x128xf32> to vector<1x8x128xf32>
    %105 = vector.shape_cast %104 : vector<1x8x128xf32> to vector<8x128xf32>
    %106 = vector.shape_cast %105 : vector<8x128xf32> to vector<1x8x128xf32>
    %c3_i32 = arith.constant 3 : i32
    %107 = vector.broadcast %c3_i32 : i32 to vector<1x8x1xi32>
    %108 = arith.cmpi eq, %22, %107 : vector<1x8x1xi32>
    %109 = vector.broadcast %106 : vector<1x8x128xf32> to vector<2x8x128xf32>
    %110 = vector.broadcast %103 : vector<2x1x128xf32> to vector<2x8x128xf32>
    %111 = arith.mulf %109, %110 : vector<2x8x128xf32>
    %112 = arith.subf %98, %111 : vector<2x8x128xf32>
    %113 = vector.shape_cast %108 : vector<1x8x1xi1> to vector<1x8x1xi1>
    %114 = vector.broadcast %113 : vector<1x8x1xi1> to vector<2x8x128xi1>
    %115 = vector.shape_cast %103 : vector<2x1x128xf32> to vector<2x1x128xf32>
    %116 = vector.broadcast %115 : vector<2x1x128xf32> to vector<2x8x128xf32>
    %117 = arith.select %114, %116, %112 : vector<2x8x128xi1>, vector<2x8x128xf32>
    %118 = vector.extract_strided_slice %117 {offsets = [0, 2, 0], sizes = [2, 1, 128], strides = [1, 1, 1]} : vector<2x8x128xf32> to vector<2x1x128xf32>
    %119 = vector.extract_strided_slice %9 {offsets = [2, 0], sizes = [1, 128], strides = [1, 1]} : vector<8x128xf32> to vector<1x128xf32>
    %120 = vector.shape_cast %119 : vector<1x128xf32> to vector<1x1x128xf32>
    %121 = vector.broadcast %120 : vector<1x1x128xf32> to vector<2x1x128xf32>
    %122 = arith.mulf %118, %121 : vector<2x1x128xf32>
    %123 = vector.extract_strided_slice %0 {offsets = [1, 0, 0], sizes = [1, 8, 128], strides = [1, 1, 1]} : vector<7x8x128xf32> to vector<1x8x128xf32>
    %124 = vector.shape_cast %123 : vector<1x8x128xf32> to vector<8x128xf32>
    %125 = vector.shape_cast %124 : vector<8x128xf32> to vector<1x8x128xf32>
    %c2_i32 = arith.constant 2 : i32
    %126 = vector.broadcast %c2_i32 : i32 to vector<1x8x1xi32>
    %127 = arith.cmpi eq, %22, %126 : vector<1x8x1xi32>
    %128 = vector.broadcast %125 : vector<1x8x128xf32> to vector<2x8x128xf32>
    %129 = vector.broadcast %122 : vector<2x1x128xf32> to vector<2x8x128xf32>
    %130 = arith.mulf %128, %129 : vector<2x8x128xf32>
    %131 = arith.subf %117, %130 : vector<2x8x128xf32>
    %132 = vector.shape_cast %127 : vector<1x8x1xi1> to vector<1x8x1xi1>
    %133 = vector.broadcast %132 : vector<1x8x1xi1> to vector<2x8x128xi1>
    %134 = vector.shape_cast %122 : vector<2x1x128xf32> to vector<2x1x128xf32>
    %135 = vector.broadcast %134 : vector<2x1x128xf32> to vector<2x8x128xf32>
    %136 = arith.select %133, %135, %131 : vector<2x8x128xi1>, vector<2x8x128xf32>
    %137 = vector.extract_strided_slice %136 {offsets = [0, 1, 0], sizes = [2, 1, 128], strides = [1, 1, 1]} : vector<2x8x128xf32> to vector<2x1x128xf32>
    %138 = vector.extract_strided_slice %9 {offsets = [1, 0], sizes = [1, 128], strides = [1, 1]} : vector<8x128xf32> to vector<1x128xf32>
    %139 = vector.shape_cast %138 : vector<1x128xf32> to vector<1x1x128xf32>
    %140 = vector.broadcast %139 : vector<1x1x128xf32> to vector<2x1x128xf32>
    %141 = arith.mulf %137, %140 : vector<2x1x128xf32>
    %142 = vector.extract_strided_slice %0 {offsets = [0, 0, 0], sizes = [1, 8, 128], strides = [1, 1, 1]} : vector<7x8x128xf32> to vector<1x8x128xf32>
    %143 = vector.shape_cast %142 : vector<1x8x128xf32> to vector<8x128xf32>
    %144 = vector.shape_cast %143 : vector<8x128xf32> to vector<1x8x128xf32>
    %c1_i32 = arith.constant 1 : i32
    %145 = vector.broadcast %c1_i32 : i32 to vector<1x8x1xi32>
    %146 = arith.cmpi eq, %22, %145 : vector<1x8x1xi32>
    %147 = vector.broadcast %144 : vector<1x8x128xf32> to vector<2x8x128xf32>
    %148 = vector.broadcast %141 : vector<2x1x128xf32> to vector<2x8x128xf32>
    %149 = arith.mulf %147, %148 : vector<2x8x128xf32>
    %150 = arith.subf %136, %149 : vector<2x8x128xf32>
    %151 = vector.shape_cast %146 : vector<1x8x1xi1> to vector<1x8x1xi1>
    %152 = vector.broadcast %151 : vector<1x8x1xi1> to vector<2x8x128xi1>
    %153 = vector.shape_cast %141 : vector<2x1x128xf32> to vector<2x1x128xf32>
    %154 = vector.broadcast %153 : vector<2x1x128xf32> to vector<2x8x128xf32>
    %155 = arith.select %152, %154, %150 : vector<2x8x128xi1>, vector<2x8x128xf32>
    %156 = vector.extract_strided_slice %155 {offsets = [0, 0, 0], sizes = [2, 1, 128], strides = [1, 1, 1]} : vector<2x8x128xf32> to vector<2x1x128xf32>
    %157 = vector.extract_strided_slice %9 {offsets = [0, 0], sizes = [1, 128], strides = [1, 1]} : vector<8x128xf32> to vector<1x128xf32>
    %158 = vector.shape_cast %157 : vector<1x128xf32> to vector<1x1x128xf32>
    %159 = vector.broadcast %158 : vector<1x1x128xf32> to vector<2x1x128xf32>
    %160 = arith.mulf %156, %159 : vector<2x1x128xf32>
    %c0_i32 = arith.constant 0 : i32
    %161 = vector.broadcast %c0_i32 : i32 to vector<1x8x1xi32>
    %162 = arith.cmpi eq, %22, %161 : vector<1x8x1xi32>
    %163 = vector.shape_cast %162 : vector<1x8x1xi1> to vector<1x8x1xi1>
    %164 = vector.broadcast %163 : vector<1x8x1xi1> to vector<2x8x128xi1>
    %165 = vector.shape_cast %160 : vector<2x1x128xf32> to vector<2x1x128xf32>
    %166 = vector.broadcast %165 : vector<2x1x128xf32> to vector<2x8x128xf32>
    %167 = arith.select %164, %166, %155 : vector<2x8x128xi1>, vector<2x8x128xf32>
    %168 = vector.extract_strided_slice %167 {offsets = [0, 0, 0], sizes = [1, 8, 128], strides = [1, 1, 1]} : vector<2x8x128xf32> to vector<1x8x128xf32>
    %169 = vector.shape_cast %168 : vector<1x8x128xf32> to vector<8x128xf32>
    %170 = vector.extract_strided_slice %167 {offsets = [0, 0, 0], sizes = [1, 8, 128], strides = [1, 1, 1]} : vector<2x8x128xf32> to vector<1x8x128xf32>
    %171 = vector.shape_cast %170 : vector<1x8x128xf32> to vector<8x128xf32>
    %172 = arith.mulf %169, %171 : vector<8x128xf32>
    %cst_6 = arith.constant dense<0.000000e+00> : vector<128xf32>
    %173 = vector.multi_reduction <add>, %172, %cst_6 [0] : vector<8x128xf32> to vector<128xf32>
    %174 = vector.shape_cast %173 : vector<128xf32> to vector<1x128xf32>
    %175 = vector.extract_strided_slice %167 {offsets = [1, 0, 0], sizes = [1, 8, 128], strides = [1, 1, 1]} : vector<2x8x128xf32> to vector<1x8x128xf32>
    %176 = vector.shape_cast %175 : vector<1x8x128xf32> to vector<8x128xf32>
    %177 = vector.extract_strided_slice %167 {offsets = [1, 0, 0], sizes = [1, 8, 128], strides = [1, 1, 1]} : vector<2x8x128xf32> to vector<1x8x128xf32>
    %178 = vector.shape_cast %177 : vector<1x8x128xf32> to vector<8x128xf32>
    %179 = arith.mulf %176, %178 : vector<8x128xf32>
    %cst_7 = arith.constant dense<0.000000e+00> : vector<128xf32>
    %180 = vector.multi_reduction <add>, %179, %cst_7 [0] : vector<8x128xf32> to vector<128xf32>
    %181 = vector.shape_cast %180 : vector<128xf32> to vector<1x128xf32>
    %182 = arith.mulf %3, %4 : vector<8x128xf32>
    %cst_8 = arith.constant dense<0.000000e+00> : vector<128xf32>
    %183 = vector.multi_reduction <add>, %182, %cst_8 [0] : vector<8x128xf32> to vector<128xf32>
    %184 = vector.shape_cast %183 : vector<128xf32> to vector<1x128xf32>
    %cst_9 = arith.constant 5.000000e-01 : f32
    %185 = vector.broadcast %cst_9 : f32 to vector<1x128xf32>
    %186 = arith.mulf %185, %184 : vector<1x128xf32>
    %187 = arith.mulf %186, %184 : vector<1x128xf32>
    %188 = arith.subf %7, %187 : vector<1x128xf32>
    %cst_10 = arith.constant 5.000000e-01 : f32
    %189 = vector.broadcast %cst_10 : f32 to vector<1x128xf32>
    %190 = arith.mulf %189, %181 : vector<1x128xf32>
    %191 = arith.subf %188, %190 : vector<1x128xf32>
    %192 = arith.mulf %6, %6 : vector<1x128xf32>
    %193 = arith.addf %174, %192 : vector<1x128xf32>
    %cst_11 = arith.constant 5.000000e+00 : f32
    %194 = vector.broadcast %cst_11 : f32 to vector<1x128xf32>
    %195 = arith.mulf %194, %193 : vector<1x128xf32>
    %196 = arith.subf %191, %195 : vector<1x128xf32>
    %197 = vector.shape_cast %196 : vector<1x128xf32> to vector<1x1x128xf32>
    %c0_12 = arith.constant 0 : index
    %c0_13 = arith.constant 0 : index
    %c0_14 = arith.constant 0 : index
    %198 = vector.load %arg3[%c0_12, %c0_13, %c0_14] : memref<1x1x128xf32, #tpu.memory_space<vmem>>, vector<1x1x128xf32>
    tpu.vector_store %arg3[%c0_12, %c0_13, %c0_14], %197 {strides = array<i32>} : memref<1x1x128xf32, #tpu.memory_space<vmem>>, vector<1x1x128xf32>,
    return
  }
  func.func @transform_0(%arg0: i32) -> (i32, i32, i32) {
    %c0_i32 = arith.constant 0 : i32
    %c0_i32_0 = arith.constant 0 : i32
    %c0_i32_1 = arith.constant 0 : i32
    return %c0_i32, %c0_i32_0, %arg0 : i32, i32, i32
  }
  func.func @transform_1(%arg0: i32) -> (i32, i32) {
    %c0_i32 = arith.constant 0 : i32
    %c0_i32_0 = arith.constant 0 : i32
    return %c0_i32, %arg0 : i32, i32
  }
  func.func @transform_2(%arg0: i32) -> (i32, i32, i32) {
    %c0_i32 = arith.constant 0 : i32
    %c0_i32_0 = arith.constant 0 : i32
    %c0_i32_1 = arith.constant 0 : i32
    return %arg0, %c0_i32, %c0_i32_0 : i32, i32, i32
  }
}

</mosaic_0001>

<bundles_post_ra>
// kernel: tpu_custom_call.1
= control target key start
LH: loop header
LB: loop body
LE: loop exit
PB: predicated region body
PF: predicated region fallthrough
CT: control target
= control target key end

     0   :  { %7 = vsyncpa [#allocation3], 0  ;;  %s1009_s0 = inlined_call_operand.hbm [shape: f32[7,8,256], index: 0, kind: input, shape index: {}]   ;;  %s1010_s1 = inlined_call_operand.hbm [shape: f32[27,256], index: 1, kind: input, shape index: {}]   ;;  %s1011_s2 = inlined_call_operand.hbm [shape: f32[2,1,128], index: 2, kind: output, shape index: {}]  }
   0x1   :  { %9 = vsyncpa [#allocation3 + $0x1], 0 }
   0x2   :  { %10 = vsyncpa [#allocation6], 0 }
   0x3   :  { %12 = vsyncpa [#allocation6 + $0x1], 0 }
   0x4   :  { %13 = vsyncpa [#allocation4], 0 }
   0x5   :  { %15 = vsyncpa [#allocation4 + $0x1], 0  ;;  %s725_s9 = smov 0   ;;  %s727_s10 = smov 0  }
   0x6   :  { %s729_s11 = smov 0   ;;  %s731_s12 = smov 0  }
   0x7 LB: > { %s746_s13 = sadd.s32 4294967295, %s702_s12   ;;  %s503_s14 = sadd.s32 4294967294, %s702_s12   ;;  %s702_s12 = sphi %s731_s12, %s1027_s12   ;;  %s698_s11 = sphi %s729_s11, %s1026_s11   ;;  %s694_s10 = sphi %s727_s10, %s1025_s10   ;;  %s690_s9 = sphi %s725_s9, %s1024_s9  }
   0x8   : > { %s750_s15 = sadd.s32 1, %s702_s12   ;;  %s28_s16 = sadd.s32 1, %s698_s11 }
   0x9   : > { %s25_s17 = ssub.s32 %s702_s12, %s750_s15  ;;  %p35_p0 = scmp.ne.s32.totalorder %s698_s11, %s694_s10 }
   0xa   : > { %p26_p1 = scmp.eq.s32.totalorder %s25_s17, 0  ;;  %p36_p2 = scmp.eq.s32.totalorder %s702_s12, 0 }
   0xb   : > { %p41_p3 = scmp.ne.s32.totalorder %s694_s10, %s690_s9  ;;  %p42_p4 = scmp.eq.s32.totalorder %s746_s13, 0 }
   0xc   : > { %s762_s18 = scalar_select %p26_p1, %s698_s11, %s28_s16  }
   0xd   : > { %p37_p5 = por %p36_p2, %p35_p0  ;;  %p764_p6 = por %p42_p4, %p41_p3 }
   0xe   : > { %p91_p7 = scmp.eq.s32.totalorder %s746_s13, 1  ;;  %p97_p8 = scmp.eq.s32.totalorder %s503_s14, 1 }
   0xf   : > { %s1014_s19 = scalar_select %p764_p6, 1, 0 }
  0x10   : > { %p533_p10 = scmp.lt.s32.totalorder %s702_s12, 2  ;;  %p771_p11 = por %p91_p7, %p35_p0 }
  0x11   : > { %p775_p12 = por %p97_p8, %p41_p3  ;;  %s780_s22 = sand.u32 1, %s698_s11  }
  0x12   : > { %s1015_s20 = scalar_select %p771_p11, 1, 0 }
  0x13   : > { %s1016_s21 = scalar_select %p775_p12, 1, 0 }
  0x14   : > { %s506_s23 = sshll.u32 %s702_s12, 7  ;;  %s514_s24 = smul.u32 56, %s780_s22 }
  0x15   : > { %s789_s27 = scalar_lea.hbm %s1009_s0, %s506_s23  ;;  %p791_p13 = pnand %p533_p10, %p37_p5 }
  0x16   : > { %s121_s29 = scalar_lea.vmem [#allocation2], %s514_s24  ;;  %s118_s3 = scalar_lea.sflag [#allocation3], %s780_s22 }
  0x17   : > { %s127_s30 = sshll.u32 %s121_s29, 4  ;;  %s572_s4 = scalar_lea.hbm %s789_s27, 896  ;;  %s795_s30 = int_to_ptr.vmem [resolvable:$true] %s127_s30 }
  0x18   : > { %p573_p1 = scmp.ne.s32.totalorder %s789_s27, %s572_s4  ;;  %p574_p2 = pneg %p791_p13 }
  0x19   : > { %s577_s7 = scalar_lea.hbm %s1009_s0, 1792  ;;  %p578_p5 = scmp.lt.u32.totalorder %s789_s27, %s1009_s0 }
  0x1a   : > { %p575_p3 = pnand %p574_p2, %p573_p1  ;;  %p579_p7 = scmp.lt.u32.totalorder %s577_s7, %s572_s4 }
  0x1b   : > { %p581_p10 = scmp.lt.u32.totalorder %s572_s4, %s789_s27 }
  0x1c   : > { %p576_p4 = pneg %p575_p3  ;;  %p580_p8 = por %p579_p7, %p578_p5 }
  0x1e   : > { %p582_p9 = por %p581_p10, %p580_p8 }
  0x20   : > { %p583_p0 = pnand %p582_p9, %p576_p4 }
  0x22   : > { %586 = shalt.err (!%p583_p0)
}
  0x23   : > { %s587_s16 = scalar_lea.vmem %s795_s30, 896  ;;  %s704_s17 = smov [#allocation2]  }
  0x24   : > { %p588_p1 = scmp.ne.s32.totalorder %s795_s30, %s587_s16  ;;  %s592_s24 = sshll.u32 %s704_s17, 4  ;;  %s593_s24 = int_to_ptr.vmem [resolvable:$false] %s592_s24 }
  0x25   : > { %s594_s25 = scalar_lea.vmem %s593_s24, 1792  ;;  %p595_p11 = scmp.lt.s32.totalorder %s795_s30, %s593_s24 }
  0x26   : > { %p590_p3 = pnand %p588_p1, %p574_p2  ;;  %p596_p5 = scmp.lt.s32.totalorder %s594_s25, %s587_s16 }
  0x28   : > { %p591_p12 = pneg %p590_p3  ;;  %p597_p7 = por %p596_p5, %p595_p11 }
  0x2a   : > { %p598_p8 = pnand %p597_p7, %p591_p12 }
  0x2c   : > { %601 = shalt.err (!%p598_p8)
}
  0x2d   : > { %s705_s26 = smov 256   ;;  %s706_s29 = smov 128  }
  0x2e   : > { %s707_s4 = smov 8   ;;  %p155_p9 = scmp.lt.s32.totalorder %s702_s12, 3 }
  0x2f   : > { %525 = dma.hbm_to_vmem [thread:$0]  (!%p791_p13), %s789_s27, 896, %s795_s30, %s118_s3, %s705_s26, %s706_s29, %s707_s4  }
  0x30   : > { %s507_s5 = sshll.u32 %s780_s22, 5  ;;  %s836_s8 = scalar_lea.hbm %s1010_s1, %s506_s23 }
  0x31   : > { %p1018_p11 = scmp.ge.s32.totalorder %s702_s12, 1  ;;  %s141_s16 = scalar_lea.vmem [#allocation5], %s507_s5 }
  0x32   : > { %s147_s17 = sshll.u32 %s141_s16, 4  ;;  %s138_s27 = scalar_lea.sflag [#allocation6], %s780_s22  ;;  %s844_s17 = int_to_ptr.vmem [resolvable:$true] %s147_s17 }
  0x33   : > { %p840_p12 = pnand %p1018_p11, %p155_p9  ;;  %s602_s30 = scalar_lea.hbm %s836_s8, 512 }
  0x34   : > { %p603_p0 = scmp.ne.s32.totalorder %s836_s8, %s602_s30  ;;  %s607_s24 = scalar_lea.hbm %s1010_s1, 1024 }
  0x35   : > { %p608_p1 = scmp.lt.u32.totalorder %s836_s8, %s1010_s1  ;;  %p609_p3 = scmp.lt.u32.totalorder %s607_s24, %s602_s30 }
  0x36   : > { %p605_p4 = pnand %p603_p0, %p574_p2  ;;  %p611_p7 = scmp.lt.u32.totalorder %s602_s30, %s836_s8 }
  0x37   : > { %p610_p5 = por %p609_p3, %p608_p1 }
  0x38   : > { %p606_p10 = pneg %p605_p4 }
  0x39   : > { %p612_p8 = por %p611_p7, %p610_p5 }
  0x3b   : > { %p613_p9 = pnand %p612_p8, %p606_p10 }
  0x3d   : > { %616 = shalt.err (!%p613_p9)
}
  0x3e   : > { %s617_s5 = scalar_lea.vmem %s844_s17, 512  ;;  %s708_s7 = smov [#allocation5]  }
  0x3f   : > { %p618_p11 = scmp.ne.s32.totalorder %s844_s17, %s617_s5  ;;  %s622_s16 = sshll.u32 %s708_s7, 4  ;;  %s623_s16 = int_to_ptr.vmem [resolvable:$false] %s622_s16 }
  0x40   : > { %s624_s23 = scalar_lea.vmem %s623_s16, 1024  ;;  %p625_p6 = scmp.lt.s32.totalorder %s844_s17, %s623_s16 }
  0x41   : > { %p620_p0 = pnand %p618_p11, %p574_p2  ;;  %p626_p1 = scmp.lt.s32.totalorder %s624_s23, %s617_s5 }
  0x43   : > { %p621_p4 = pneg %p620_p0  ;;  %p627_p3 = por %p626_p1, %p625_p6 }
  0x45   : > { %p628_p5 = pnand %p627_p3, %p621_p4 }
  0x47   : > { %631 = shalt.err (!%p628_p5)
}
  0x48   : > { %528 = dma.hbm_to_vmem [thread:$0]  (!%p791_p13), %s836_s8, 512, %s844_s17, %s138_s27, %s705_s26, %s706_s29, %s707_s4  }
  0x49   : > { %159 = sbr.rel (%p840_p12) target bundleno = 200 (0xc8), region = 28  ;;  %s878_s30 = sand.u32 (!%p840_p12), 1, %s694_s10  }
  0x4a   : > { %s515_s3 = smul.u32 (!%p840_p12), 56, %s878_s30  ;;  %s162_s24 = scalar_lea.sflag (!%p840_p12), [#allocation3], %s878_s30 }
  0x4b   : > { %p1020_p6 = scmp.ne.s32.totalorder (!%p840_p12), %s1014_s19, 0 }
  0x4c   : > { %s882_s28 = scalar_lea.vmem (!%p840_p12), [#allocation2], %s515_s3 }
  0x50   : > { %677 = dma.done.wait (%p1020_p6), %s162_s24, 896  }
  0x51   : > { %679 = vsyncadd (%p1020_p6), %s162_s24, 4294966400  ;;  %s510_s22 = sshll.u32 %s878_s30, 5  ;;  %s171_s26 = scalar_lea.sflag [#allocation6], %s878_s30 }
  0x52   : > { %s174_s29 = scalar_lea.vmem [#allocation5], %s510_s22 }
  0x53   : > { %681 = dma.done.wait (%p1020_p6), %s171_s26, 512  }
  0x54   : > { %683 = vsyncadd (%p1020_p6), %s171_s26, 4294966784  ;;  %v212_v0 = vlaneseq  ;;  %v206_v2 = vld [vmem:[%s174_s29] sm:$0xff]  ;;  %v207_v4 = vld [vmem:[%s174_s29 + $0x8] sm:$0xff]  ;;  %s198_s19 = scalar_lea.vmem [#allocation7], %s878_s30  ;;  %s511_s8 = sshll.u32 %s746_s13, 4 }
  0x55   : > { %570 = vrcp.f32 %v206_v2  ;;  %v208_v5 = vld [vmem:[%s174_s29 + $0x10] sm:$0xff]  ;;  %v899_v6 = vld [vmem:[%s174_s29 + $0x18] sm:$0x7]  ;;  %v202_v59 = vld [vmem:[%s882_s28 + $0x18] sm:$0xff]  ;;  %s414_s4 = sshll.u32 %s198_s19, 4  ;;  %s967_s27 = scalar_lea.hbm %s1011_s2, %s511_s8  ;;  %s962_s4 = int_to_ptr.vmem [resolvable:$true] %s414_s4 }
  0x56   : > { %v894_v1 = vshrl.u32 %v212_v0, 7  ;;  %v381_v7 = vmul.f32 %v208_v5, %v207_v4  ;;  %v205_v18 = vld [vmem:[%s882_s28 + $0x30] sm:$0xff]  ;;  %v204_v34 = vld [vmem:[%s882_s28 + $0x28] sm:$0xff]  ;;  %v203_v47 = vld [vmem:[%s882_s28 + $0x20] sm:$0xff]  ;;  %s402_s25 = scalar_lea.sflag [#allocation4], %s878_s30  ;;  %s632_s6 = scalar_lea.vmem %s962_s4, 16 }
  0x57   : > { %p633_p13 = scmp.ne.s32.totalorder %s962_s4, %s632_s6  ;;  %p1021_p2 = scmp.ne.s32.totalorder %s1015_s20, 0 }
  0x58   : > { %v897_v3 = vsub.s32 0, %v894_v1  ;;  %vm214_vm0 = vcmp.eq.s32.totalorder %v894_v1, 7  ;;  %v382_v9 = vrot.slane %v381_v7, 4  ;;  %v226_v12 = vsub.s32 7, %v894_v1  ;;  %s709_s13 = smov [#allocation7]  }
  0x59   : > { %v243_v28 = vsub.s32 6, %v894_v1  ;;  %vm240_vm1 = vcmp.eq.s32.totalorder %v894_v1, 6  ;;  %v262_v42 = vsub.s32 5, %v894_v1  ;;  %vm259_vm2 = vcmp.eq.s32.totalorder %v894_v1, 5  ;;  %p634_p12 = pnand %p633_p13, %p1021_p2  ;;  %s636_s5 = sshll.u32 %s709_s13, 4  ;;  %s637_s5 = int_to_ptr.vmem [resolvable:$false] %s636_s5 }
  0x5a   : > { %v220_v8 = vrot.slane %v899_v6, %v897_v3  ;;  %v383_v10 = vadd.f32 %v382_v9, %v381_v7  ;;  %v281_v54 = vsub.s32 4, %v894_v1  ;;  %vm278_vm3 = vcmp.eq.s32.totalorder %v894_v1, 4  ;;  %s638_s7 = scalar_lea.vmem %s637_s5, 32  ;;  %p639_p7 = scmp.lt.s32.totalorder %s962_s4, %s637_s5 }
  0x5b   : > { %vm297_vm4 = vcmp.eq.s32.totalorder %v894_v1, 3  ;;  %vm316_vm5 = vcmp.eq.s32.totalorder %v894_v1, 2  ;;  %vm335_vm6 = vcmp.eq.s32.totalorder %v894_v1, 1  ;;  %vm354_vm7 = vcmp.eq.s32.totalorder %v894_v1, 0  ;;  %p635_p10 = pneg %p634_p12  ;;  %p640_p8 = scmp.lt.s32.totalorder %s638_s7, %s632_s6 }
  0x5c   : > { %v221_v11 = vsel %vm214_vm0, %v220_v8, 0.0  ;;  %v384_v13 = vrot.slane %v383_v10, 2 }
  0x5d   : > { %p641_p9 = por %p640_p8, %p639_p7 }
  0x5e   : > { %v385_v17 = vadd.f32 %v384_v13, %v383_v10  ;;  %v201_v10 = vld [vmem:[%s882_s28 + $0x10] sm:$0xff] }
  0x5f   : > { %v907_v14 = vpop.eup %570  ;;  %p642_p11 = pnand %p641_p9, %p635_p10 }
  0x60   : > { %v222_v15 = vmul.f32 %v907_v14, %v221_v11  ;;  %v223_v16 = vmul.f32 %v907_v14, %v207_v4  ;;  %v386_v21 = vrot.slane %v385_v17, 1 }
  0x62   : > { %v227_v19 = vrot.slane %v222_v15, %v226_v12  ;;  %v231_v20 = vrot.slane %v223_v16, %v226_v12  ;;  %v387_v24 = vadd.f32 %v386_v21, %v385_v17 }
  0x64   : > { %v232_v22 = vmul.f32 %v227_v19, %v205_v18  ;;  %v233_v23 = vmul.f32 %v231_v20, %v205_v18  ;;  %v388_v27 = vmul.f32 0.5, %v387_v24  ;;  %v319_v18 = vsub.s32 2, %v894_v1 }
  0x66   : > { %v234_v25 = vsub.f32 %v221_v11, %v232_v22  ;;  %v235_v26 = vsub.f32 %v207_v4, %v233_v23  ;;  %v917_v31 = vmul.f32 %v388_v27, %v387_v24  ;;  %v300_v4 = vsub.s32 3, %v894_v1  ;;  %v200_v23 = vld [vmem:[%s882_s28 + $0x8] sm:$0xff] }
  0x68   : > { %v236_v29 = vsel %vm214_vm0, %v227_v19, %v234_v25  ;;  %v237_v30 = vsel %vm214_vm0, %v231_v20, %v235_v26  ;;  %v390_v35 = vsub.f32 %v899_v6, %v917_v31 }
  0x69   : > { %v238_v32 = vmul.f32 %v907_v14, %v236_v29  ;;  %v239_v33 = vmul.f32 %v907_v14, %v237_v30 }
  0x6b   : > { %v244_v36 = vrot.slane %v238_v32, %v243_v28  ;;  %v248_v37 = vrot.slane %v239_v33, %v243_v28 }
  0x6d   : > { %v249_v38 = vmul.f32 %v244_v36, %v204_v34  ;;  %v250_v39 = vmul.f32 %v248_v37, %v204_v34 }
  0x6f   : > { %v251_v40 = vsub.f32 %v236_v29, %v249_v38  ;;  %v252_v41 = vsub.f32 %v237_v30, %v250_v39  ;;  %v338_v30 = vsub.s32 1, %v894_v1 }
  0x71   : > { %v255_v43 = vsel %vm240_vm1, %v244_v36, %v251_v40  ;;  %v256_v44 = vsel %vm240_vm1, %v248_v37, %v252_v41  ;;  %v199_v37 = vld [vmem:[%s882_s28] sm:$0xff] }
  0x72   : > { %v257_v45 = vmul.f32 %v907_v14, %v255_v43  ;;  %v258_v46 = vmul.f32 %v907_v14, %v256_v44 }
  0x74   : > { %v263_v48 = vrot.slane %v257_v45, %v262_v42  ;;  %v267_v49 = vrot.slane %v258_v46, %v262_v42 }
  0x76   : > { %v268_v50 = vmul.f32 %v263_v48, %v203_v47  ;;  %v269_v51 = vmul.f32 %v267_v49, %v203_v47 }
  0x78   : > { %v270_v52 = vsub.f32 %v255_v43, %v268_v50  ;;  %v271_v53 = vsub.f32 %v256_v44, %v269_v51 }
  0x7a   : > { %v274_v55 = vsel %vm259_vm2, %v263_v48, %v270_v52  ;;  %v275_v56 = vsel %vm259_vm2, %v267_v49, %v271_v53 }
  0x7b   : > { %v276_v57 = vmul.f32 %v907_v14, %v274_v55  ;;  %v277_v58 = vmul.f32 %v907_v14, %v275_v56 }
  0x7d   : > { %v282_v60 = vrot.slane %v276_v57, %v281_v54  ;;  %v286_v61 = vrot.slane %v277_v58, %v281_v54 }
  0x7f   : > { %v287_v62 = vmul.f32 %v282_v60, %v202_v59  ;;  %v288_v63 = vmul.f32 %v286_v61, %v202_v59 }
  0x81   : > { %v289_v0 = vsub.f32 %v274_v55, %v287_v62  ;;  %v290_v2 = vsub.f32 %v275_v56, %v288_v63 }
  0x83   : > { %v293_v5 = vsel %vm278_vm3, %v282_v60, %v289_v0  ;;  %v294_v7 = vsel %vm278_vm3, %v286_v61, %v290_v2 }
  0x84   : > { %v295_v8 = vmul.f32 %v907_v14, %v293_v5  ;;  %v296_v9 = vmul.f32 %v907_v14, %v294_v7 }
  0x86   : > { %v301_v11 = vrot.slane %v295_v8, %v300_v4  ;;  %v305_v12 = vrot.slane %v296_v9, %v300_v4 }
  0x88   : > { %v306_v13 = vmul.f32 %v301_v11, %v201_v10  ;;  %v307_v15 = vmul.f32 %v305_v12, %v201_v10 }
  0x8a   : > { %v308_v16 = vsub.f32 %v293_v5, %v306_v13  ;;  %v309_v17 = vsub.f32 %v294_v7, %v307_v15 }
  0x8c   : > { %v312_v19 = vsel %vm297_vm4, %v301_v11, %v308_v16  ;;  %v313_v20 = vsel %vm297_vm4, %v305_v12, %v309_v17 }
  0x8d   : > { %v314_v21 = vmul.f32 %v907_v14, %v312_v19  ;;  %v315_v22 = vmul.f32 %v907_v14, %v313_v20 }
  0x8f   : > { %v320_v24 = vrot.slane %v314_v21, %v319_v18  ;;  %v324_v25 = vrot.slane %v315_v22, %v319_v18 }
  0x91   : > { %v325_v26 = vmul.f32 %v320_v24, %v200_v23  ;;  %v326_v27 = vmul.f32 %v324_v25, %v200_v23 }
  0x93   : > { %v327_v28 = vsub.f32 %v312_v19, %v325_v26  ;;  %v328_v29 = vsub.f32 %v313_v20, %v326_v27 }
  0x95   : > { %v331_v32 = vsel %vm316_vm5, %v320_v24, %v327_v28  ;;  %v332_v33 = vsel %vm316_vm5, %v324_v25, %v328_v29 }
  0x96   : > { %v333_v34 = vmul.f32 %v907_v14, %v331_v32  ;;  %v334_v36 = vmul.f32 %v907_v14, %v332_v33 }
  0x98   : > { %v339_v38 = vrot.slane %v333_v34, %v338_v30  ;;  %v343_v39 = vrot.slane %v334_v36, %v338_v30 }
  0x9a   : > { %v344_v40 = vmul.f32 %v339_v38, %v199_v37  ;;  %v345_v41 = vmul.f32 %v343_v39, %v199_v37 }
  0x9c   : > { %v346_v42 = vsub.f32 %v331_v32, %v344_v40  ;;  %v347_v43 = vsub.f32 %v332_v33, %v345_v41 }
  0x9e   : > { %v350_v44 = vsel %vm335_vm6, %v339_v38, %v346_v42  ;;  %v351_v45 = vsel %vm335_vm6, %v343_v39, %v347_v43 }
  0x9f   : > { %v352_v46 = vmul.f32 %v907_v14, %v350_v44  ;;  %v353_v47 = vmul.f32 %v907_v14, %v351_v45 }
  0xa1   : > { %v360_v48 = vrot.slane %v352_v46, %v897_v3  ;;  %v364_v49 = vrot.slane %v353_v47, %v897_v3  ;;  %v393_v3 = vmul.f32 %v899_v6, %v899_v6 }
  0xa3   : > { %v365_v50 = vsel %vm354_vm7, %v360_v48, %v350_v44  ;;  %v366_v51 = vsel %vm354_vm7, %v364_v49, %v351_v45 }
  0xa4   : > { %v367_v52 = vmul.f32 %v365_v50, %v365_v50  ;;  %v374_v53 = vmul.f32 %v366_v51, %v366_v51 }
  0xa6   : > { %v368_v54 = vrot.slane %v367_v52, 4  ;;  %v375_v55 = vrot.slane %v374_v53, 4 }
  0xa8   : > { %v369_v56 = vadd.f32 %v368_v54, %v367_v52  ;;  %v376_v57 = vadd.f32 %v375_v55, %v374_v53 }
  0xaa   : > { %v370_v58 = vrot.slane %v369_v56, 2  ;;  %v377_v59 = vrot.slane %v376_v57, 2 }
  0xac   : > { %v371_v60 = vadd.f32 %v370_v58, %v369_v56  ;;  %v378_v14 = vadd.f32 %v377_v59, %v376_v57 }
  0xae   : > { %v372_v61 = vrot.slane %v371_v60, 1  ;;  %v379_v1 = vrot.slane %v378_v14, 1 }
  0xb0   : > { %v373_v62 = vadd.f32 %v372_v61, %v371_v60  ;;  %v380_v63 = vadd.f32 %v379_v1, %v378_v14 }
  0xb2   : > { %v391_v0 = vmul.f32 0.5, %v380_v63  ;;  %v394_v2 = vadd.f32 %v393_v3, %v373_v62 }
  0xb4   : > { %v392_v4 = vsub.f32 %v390_v35, %v391_v0  ;;  %v395_v5 = vmul.f32 5.0, %v394_v2 }
  0xb6   : > { %v397_v7 = vrot.slane %v395_v5, 7 }
  0xb8   : > { %v399_v8 = vsub.f32 %v392_v4, %v397_v7 }
  0xba   : > { %400 = vst [vmem:[%s198_s19 - $0x2] sm:$0x4] %v399_v8 }
  0xbb   : > { %645 = shalt.err (!%p642_p11)
}
  0xbc   : > { %s646_s16 = scalar_lea.hbm %s967_s27, 16  ;;  %s650_s3 = scalar_lea.hbm %s1011_s2, 32 }
  0xbd   : > { %p647_p0 = scmp.ne.s32.totalorder %s967_s27, %s646_s16  ;;  %p651_p3 = scmp.lt.u32.totalorder %s967_s27, %s1011_s2 }
  0xbe   : > { %p652_p5 = scmp.lt.u32.totalorder %s650_s3, %s646_s16  ;;  %p654_p13 = scmp.lt.u32.totalorder %s646_s16, %s967_s27 }
  0xbf   : > { %p648_p4 = pnand %p647_p0, %p1021_p2 }
  0xc0   : > { %p653_p6 = por %p652_p5, %p651_p3 }
  0xc1   : > { %p649_p1 = pneg %p648_p4 }
  0xc2   : > { %p655_p12 = por %p654_p13, %p653_p6 }
  0xc4   : > { %p656_p10 = pnand %p655_p12, %p649_p1 }
  0xc6   : > { %659 = shalt.err (!%p656_p10)
}
  0xc7   : > { %520 = dma.vmem_to_hbm [thread:$0]  (%p1021_p2), %s962_s4, 16, %s967_s27, %s402_s25  }
  0xc8 PF: > { %s426_s22 = sand.u32 1, %s690_s9   ;;  %p1022_p7 = scmp.ne.s32.totalorder %s1016_s21, 0 }
  0xc9   : > { %p1023_p8 = scmp.ge.s32.totalorder %s702_s12, 2  ;;  %s427_s26 = scalar_lea.sflag [#allocation4], %s426_s22 }
  0xcb   : > { %p530_p9 = pnand %p1023_p8, %p1022_p7 }
  0xcd   : > { %685 = dma.done.wait (!%p530_p9), %s427_s26, 16  }
  0xce   : > { %687 = vsyncadd (!%p530_p9), %s427_s26, 4294967280  ;;  %p18_p11 = scmp.ge.s32.totalorder %s750_s15, 4   ;;  %s1024_s9 = smov %s694_s10 }
  0xcf   : > { %s1025_s10 = smov %s698_s11  ;;  %s1026_s11 = smov %s762_s18 }
  0xd0   : > { %s1027_s12 = smov %s750_s15  ;;  %20 = sbr.rel (!%p18_p11) target bundleno = 7 (0x7), region = 86 }
  0xd7   :  { %431 = vsyncpa [#allocation3], 1 }
  0xd8   :  { %433 = vsyncpa [#allocation3 + $0x1], 1 }
  0xd9   :  { %434 = vsyncpa [#allocation6], 1 }
  0xda   :  { %436 = vsyncpa [#allocation6 + $0x1], 1 }
  0xdb   :  { %437 = vsyncpa [#allocation4], 1 }
  0xdc   :  { %439 = vsyncpa [#allocation4 + $0x1], 1 }

</bundles_post_ra>
